<compile_context>
chip_gen: v6e
topology: v6e:2x2x1
jax: 0.10.0
libtpu: 0.0.40
codegen_flags: <defaults>
</compile_context>

<pallas_src>
import functools

import jax
import jax.numpy as jnp
from jax.experimental import pallas as pl
from jax.experimental.pallas import tpu as pltpu


_SQRT_HALF = 0.7071067811865476


def _round_up(x, m):
    return (x + m - 1) // m * m


def _erf(x):
    # Abramowitz & Stegun 7.1.26 rational approximation, |err| <= 1.5e-7.
    # exp + reciprocal go to the EUP slot; one Newton step restores ~f32 accuracy
    # of the approximate reciprocal at the cost of 2 cheap VALU ops.
    p = 0.3275911
    a1, a2, a3, a4, a5 = (0.254829592, -0.284496736, 1.421413741,
                          -1.453152027, 1.061405429)
    s = jnp.where(x >= 0.0, 1.0, -1.0)
    ax = x * s
    d = 1.0 + p * ax
    t = pl.reciprocal(d, approx=True)
    t = t * (2.0 - d * t)                       # one Newton refinement step
    poly = ((((a5 * t + a4) * t + a3) * t + a2) * t + a1) * t
    return s * (1.0 - poly * jnp.exp(-ax * ax))


def _gelu_exact(x):
    # Exact (erf-based) GELU -- matches torch.nn.GELU() default.
    return 0.5 * x * (1.0 + _erf(x * _SQRT_HALF))


def _fc_kernel(xm_ref, xh_ref, w1_ref, b1_ref, w2_ref, b2_ref, o_ref,
               win_ref, stk_ref, *, cols_pad, tl, cpad):
    # xm_ref : (Cpad, TL)          current spatial tile of the flattened padded plane
    # xh_ref : (Cpad, HALO_PAD)    right halo of the tile (second view of same array)
    # w1_ref : (Cmid, 9*Cpad)      fused tap-major 3x3 weights, x.dtype
    # b1_ref : (Cmid, 1) f32
    # w2_ref : (C, Cmid)           x.dtype
    # b2_ref : (C, 1) f32
    # o_ref  : (C, TL)
    # win_ref: (Cpad, TL+HALO_PAD) scratch: contiguous tile+halo window
    # stk_ref: (9*Cpad, TL)        scratch: stacked (im2col) matmul operand

    # Stitch tile + halo into one contiguous window (both copies lane-aligned).
    win_ref[:, :tl] = xm_ref[...]
    win_ref[:, tl:] = xh_ref[...]

    # Build the stacked operand: one lane-shifted copy of the window per tap.
    # Sublane offsets tap*Cpad are multiples of 8, so the stores are unmasked.
    for dy in range(3):
        for dx in range(3):
            tap = 3 * dy + dx
            off = dy * cols_pad + dx
            stk_ref[tap * cpad:(tap + 1) * cpad, :] = win_ref[:, off:off + tl]

    # Conv3x3 as a single MXU matmul with contraction K = 9*Cpad, f32 accumulation.
    acc = jnp.dot(w1_ref[...], stk_ref[...], preferred_element_type=jnp.float32)
    acc = acc + b1_ref[...]

    # Exact GELU (VPU + EUP).
    h = _gelu_exact(acc).astype(w2_ref.dtype)

    # Conv1x1 as a second MXU matmul (x.dtype operands, f32 accumulation).
    y = jnp.dot(w2_ref[...], h, preferred_element_type=jnp.float32)
    y = y + b2_ref[...]
    o_ref[...] = y.astype(o_ref.dtype)


def fc_forward(x, w1, b1, w2, b2, *, tile_lanes=None):
    """Fused Conv3x3(pad=1) -> exact GELU -> Conv1x1 on NCHW input.

    x : (N, C, H, W)
    w1: (Cmid, C, 3, 3), b1: (Cmid,)            torch Conv2d(dim, hidden, 3, 1, 1)
    w2: (C, Cmid, 1, 1) or (C, Cmid), b2: (C,)  torch Conv2d(hidden, dim, 1, 1, 0)
    returns (N, C, H, W)
    """
    N, C, H, W = x.shape
    Cmid = w1.shape[0]
    if w2.ndim == 4:
        w2 = w2[:, :, 0, 0]
    dtype = x.dtype

    cols_pad = W + 2                       # width of one zero-padded row
    halo = 2 * cols_pad + 2                # largest flat tap offset
    halo_pad = _round_up(halo, 128)        # lane-aligned halo block width
    L = H * cols_pad                       # flat length covering all valid outputs

    # Spatial tile length: a multiple of halo_pad (so the halo block's offset
    # (t+1)*TL is an integer block index) that bounds the per-step VMEM footprint.
    if tile_lanes is None:
        tile_lanes = 2048
    TL = min(_round_up(tile_lanes, halo_pad), _round_up(L, halo_pad))
    num_tiles = (L + TL - 1) // TL
    Lq = num_tiles * TL                    # lane-dense output width per image
    Pp = Lq + halo_pad                     # input width incl. the last tile's halo
    Cpad = _round_up(C, 8)                 # sublane-aligned channel count

    # Zero-pad: conv pad=1 (H/W), channels up to Cpad, flatten spatial, right-pad
    # the lane axis to Pp so every tile's halo read stays in bounds (reads zeros).
    xp = jnp.pad(x, ((0, 0), (0, Cpad - C), (1, 1), (1, 1)))
    xf = xp.reshape(N, Cpad, (H + 2) * cols_pad)
    xf = jnp.pad(xf, ((0, 0), (0, 0), (0, Pp - (H + 2) * cols_pad)))

    # Fused tap-major 3x3 weights: (Cmid, C, 3, 3) -> (Cmid, 9*Cpad), zero columns
    # for the padded channels, x.dtype operands (accumulation stays f32).
    w1_cat = jnp.pad(jnp.transpose(w1, (0, 2, 3, 1)),
                     ((0, 0), (0, 0), (0, 0), (0, Cpad - C)))
    w1_cat = w1_cat.reshape(Cmid, 9 * Cpad).astype(dtype)
    b1_col = b1.reshape(Cmid, 1).astype(jnp.float32)
    w2_mat = w2.astype(dtype)
    b2_col = b2.reshape(C, 1).astype(jnp.float32)

    kernel = functools.partial(_fc_kernel, cols_pad=cols_pad, tl=TL, cpad=Cpad)
    tiles_per_halo = TL // halo_pad
    itemsize = jnp.dtype(dtype).itemsize

    block_bytes = (
        2 * Cpad * TL * itemsize               # main input tile (double-buffered)
        + 2 * Cpad * halo_pad * itemsize       # halo tile (double-buffered)
        + 2 * C * TL * itemsize                # output tile (double-buffered)
        + Cpad * (TL + halo_pad) * itemsize    # window scratch
        + 9 * Cpad * TL * itemsize             # stacked operand scratch
        + (Cmid * 9 * Cpad + C * Cmid) * itemsize + (Cmid + C) * 4  # resident weights
        + 2 * Cmid * TL * 4                    # live f32 acc / gelu values
    )
    # 32 MiB is safe on every generation (v7x scoped default); v5e/v6e can raise it
    # further when bigger tiles are requested.
    vmem_limit = int(min(64 * 2**20, max(32 * 2**20, 2 * block_bytes)))

    cost = pl.CostEstimate(
        flops=2 * N * H * W * Cmid * (9 * C + C),
        transcendentals=N * Cmid * H * W,
        bytes_accessed=int(2 * N * C * H * W * itemsize
                           + (w1.size + w2.size) * itemsize),
    )

    out_flat = pl.pallas_call(
        kernel,
        out_shape=jax.ShapeDtypeStruct((N, C, Lq), dtype),
        grid_spec=pltpu.PrefetchScalarGridSpec(
            num_scalar_prefetch=0,
            grid=(N, num_tiles),
            in_specs=[
                # Current spatial tile of the flattened padded plane.
                pl.BlockSpec((None, Cpad, TL), lambda n, t: (n, 0, t)),
                # Right halo of the tile (second view of the same array).
                pl.BlockSpec((None, Cpad, halo_pad),
                             lambda n, t: (n, 0, (t + 1) * tiles_per_halo)),
                pl.BlockSpec((Cmid, 9 * Cpad), lambda n, t: (0, 0)),
                pl.BlockSpec((Cmid, 1), lambda n, t: (0, 0)),
                pl.BlockSpec((C, Cmid), lambda n, t: (0, 0)),
                pl.BlockSpec((C, 1), lambda n, t: (0, 0)),
            ],
            out_specs=pl.BlockSpec((None, C, TL), lambda n, t: (n, 0, t)),
            scratch_shapes=[
                pltpu.VMEM((Cpad, TL + halo_pad), dtype),
                pltpu.VMEM((9 * Cpad, TL), dtype),
            ],
        ),
        compiler_params=pltpu.CompilerParams(
            dimension_semantics=("parallel", "parallel"),
            vmem_limit_bytes=vmem_limit,
        ),
        cost_estimate=cost,
    )(xf, xf, w1_cat, b1_col, w2_mat, b2_col)

    # Trim the per-row seam columns and the lane padding of the flattened layout.
    out = out_flat[:, :, :L].reshape(N, C, H, cols_pad)[:, :, :, :W]
    return out


if __name__ == "__main__":
    key = jax.random.PRNGKey(0)
    N, C, H, W = 2, 4, 16, 16
    growth_rate = 2.0
    Cmid = int(C * growth_rate)  # 8

    k1, k2, k3, k4, k5 = jax.random.split(key, 5)
    x = jax.random.normal(k1, (N, C, H, W), dtype=jnp.float32)
    w1 = jax.random.normal(k2, (Cmid, C, 3, 3), dtype=jnp.float32) * 0.2
    b1 = jax.random.normal(k3, (Cmid,), dtype=jnp.float32) * 0.1
    w2 = jax.random.normal(k4, (C, Cmid, 1, 1), dtype=jnp.float32) * 0.2
    b2 = jax.random.normal(k5, (C,), dtype=jnp.float32) * 0.1

    # Multi-tile path (tile_lanes=128 -> 3 spatial tiles, exercises halo stitching)
    # and the default single-tile path.
    y_tiled = jax.block_until_ready(fc_forward(x, w1, b1, w2, b2, tile_lanes=128))
    y_full = jax.block_until_ready(fc_forward(x, w1, b1, w2, b2))

    # Pure-JAX reference: Conv2d(3x3, pad 1) -> exact GELU -> Conv2d(1x1), NCHW.
    hp = jax.lax.conv_general_dilated(
        x, w1, window_strides=(1, 1), padding=((1, 1), (1, 1)),
        dimension_numbers=("NCHW", "OIHW", "NCHW"),
        precision=jax.lax.Precision.HIGHEST) + b1[None, :, None, None]
    hg = jax.nn.gelu(hp, approximate=False)
    ref = jax.lax.conv_general_dilated(
        hg, w2, window_strides=(1, 1), padding=((0, 0), (0, 0)),
        dimension_numbers=("NCHW", "OIHW", "NCHW"),
        precision=jax.lax.Precision.HIGHEST) + b2[None, :, None, None]

    assert y_tiled.shape == ref.shape, f"shape mismatch {y_tiled.shape} vs {ref.shape}"
    assert jnp.allclose(y_tiled, ref, atol=2e-3, rtol=2e-3), "tiled kernel mismatch"
    assert jnp.allclose(y_full, ref, atol=2e-3, rtol=2e-3), "full-plane kernel mismatch"

    print("KERNEL_OK")
</pallas_src>

<mosaic_0001>
module attributes {stable_mosaic.version = 11 : i64} {
  func.func @_fc_kernel(%arg0: i32, %arg1: i32, %arg2: memref<1x8x128xf32, #tpu.memory_space<vmem>>, %arg3: memref<1x8x128xf32, #tpu.memory_space<vmem>>, %arg4: memref<8x72xf32, #tpu.memory_space<vmem>>, %arg5: memref<8x1xf32, #tpu.memory_space<vmem>>, %arg6: memref<4x8xf32, #tpu.memory_space<vmem>>, %arg7: memref<4x1xf32, #tpu.memory_space<vmem>>, %arg8: memref<1x4x128xf32, #tpu.memory_space<vmem>>, %arg9: memref<8x256xf32, #tpu.memory_space<vmem>>, %arg10: memref<72x128xf32, #tpu.memory_space<vmem>>) attributes {dimension_semantics = [#tpu.dimension_semantics<parallel>, #tpu.dimension_semantics<parallel>], iteration_bounds = array<i64: 2, 3>, scalar_prefetch = 0 : i64, scratch_operands = 2 : i64, tpu.core_type = #tpu.core_type<tc>, window_params = [{transform_indices = @transform_0, window_bounds = array<i64: 1, 8, 128>}, {transform_indices = @transform_1, window_bounds = array<i64: 1, 8, 128>}, {pipeline_mode = #tpu.pipeline_mode<synchronous>, transform_indices = @transform_2, window_bounds = array<i64: 8, 72>}, {pipeline_mode = #tpu.pipeline_mode<synchronous>, transform_indices = @transform_3, window_bounds = array<i64: 8, 1>}, {pipeline_mode = #tpu.pipeline_mode<synchronous>, transform_indices = @transform_4, window_bounds = array<i64: 4, 8>}, {pipeline_mode = #tpu.pipeline_mode<synchronous>, transform_indices = @transform_5, window_bounds = array<i64: 4, 1>}, {transform_indices = @transform_6, window_bounds = array<i64: 1, 4, 128>}]} {
    %c0 = arith.constant 0 : index
    %c0_0 = arith.constant 0 : index
    %c0_1 = arith.constant 0 : index
    %0 = vector.load %arg2[%c0, %c0_0, %c0_1] : memref<1x8x128xf32, #tpu.memory_space<vmem>>, vector<1x8x128xf32>
    %1 = vector.shape_cast %0 : vector<1x8x128xf32> to vector<8x128xf32>
    %c0_2 = arith.constant 0 : index
    %c0_3 = arith.constant 0 : index
    %2 = vector.load %arg9[%c0_2, %c0_3] : memref<8x256xf32, #tpu.memory_space<vmem>>, vector<8x128xf32>
    tpu.vector_store %arg9[%c0_2, %c0_3], %1 {strides = array<i32>} : memref<8x256xf32, #tpu.memory_space<vmem>>, vector<8x128xf32>,
    %c0_4 = arith.constant 0 : index
    %c0_5 = arith.constant 0 : index
    %c0_6 = arith.constant 0 : index
    %3 = vector.load %arg3[%c0_4, %c0_5, %c0_6] : memref<1x8x128xf32, #tpu.memory_space<vmem>>, vector<1x8x128xf32>
    %4 = vector.shape_cast %3 : vector<1x8x128xf32> to vector<8x128xf32>
    %c0_7 = arith.constant 0 : index
    %c128 = arith.constant 128 : index
    %5 = vector.load %arg9[%c0_7, %c128] : memref<8x256xf32, #tpu.memory_space<vmem>>, vector<8x128xf32>
    tpu.vector_store %arg9[%c0_7, %c128], %4 {strides = array<i32>} : memref<8x256xf32, #tpu.memory_space<vmem>>, vector<8x128xf32>,
    %c0_8 = arith.constant 0 : index
    %c0_9 = arith.constant 0 : index
    %6 = vector.load %arg9[%c0_8, %c0_9] : memref<8x256xf32, #tpu.memory_space<vmem>>, vector<8x128xf32>
    %c0_10 = arith.constant 0 : index
    %c0_11 = arith.constant 0 : index
    %7 = vector.load %arg10[%c0_10, %c0_11] : memref<72x128xf32, #tpu.memory_space<vmem>>, vector<8x128xf32>
    tpu.vector_store %arg10[%c0_10, %c0_11], %6 {strides = array<i32>} : memref<72x128xf32, #tpu.memory_space<vmem>>, vector<8x128xf32>,
    %c0_12 = arith.constant 0 : index
    %c1 = arith.constant 1 : index
    %8 = vector.load %arg9[%c0_12, %c1] : memref<8x256xf32, #tpu.memory_space<vmem>>, vector<8x128xf32>
    %c8 = arith.constant 8 : index
    %c0_13 = arith.constant 0 : index
    %9 = vector.load %arg10[%c8, %c0_13] : memref<72x128xf32, #tpu.memory_space<vmem>>, vector<8x128xf32>
    tpu.vector_store %arg10[%c8, %c0_13], %8 {strides = array<i32>} : memref<72x128xf32, #tpu.memory_space<vmem>>, vector<8x128xf32>,
    %c0_14 = arith.constant 0 : index
    %c2 = arith.constant 2 : index
    %10 = vector.load %arg9[%c0_14, %c2] : memref<8x256xf32, #tpu.memory_space<vmem>>, vector<8x128xf32>
    %c16 = arith.constant 16 : index
    %c0_15 = arith.constant 0 : index
    %11 = vector.load %arg10[%c16, %c0_15] : memref<72x128xf32, #tpu.memory_space<vmem>>, vector<8x128xf32>
    tpu.vector_store %arg10[%c16, %c0_15], %10 {strides = array<i32>} : memref<72x128xf32, #tpu.memory_space<vmem>>, vector<8x128xf32>,
    %c0_16 = arith.constant 0 : index
    %c18 = arith.constant 18 : index
    %12 = vector.load %arg9[%c0_16, %c18] : memref<8x256xf32, #tpu.memory_space<vmem>>, vector<8x128xf32>
    %c24 = arith.constant 24 : index
    %c0_17 = arith.constant 0 : index
    %13 = vector.load %arg10[%c24, %c0_17] : memref<72x128xf32, #tpu.memory_space<vmem>>, vector<8x128xf32>
    tpu.vector_store %arg10[%c24, %c0_17], %12 {strides = array<i32>} : memref<72x128xf32, #tpu.memory_space<vmem>>, vector<8x128xf32>,
    %c0_18 = arith.constant 0 : index
    %c19 = arith.constant 19 : index
    %14 = vector.load %arg9[%c0_18, %c19] : memref<8x256xf32, #tpu.memory_space<vmem>>, vector<8x128xf32>
    %c32 = arith.constant 32 : index
    %c0_19 = arith.constant 0 : index
    %15 = vector.load %arg10[%c32, %c0_19] : memref<72x128xf32, #tpu.memory_space<vmem>>, vector<8x128xf32>
    tpu.vector_store %arg10[%c32, %c0_19], %14 {strides = array<i32>} : memref<72x128xf32, #tpu.memory_space<vmem>>, vector<8x128xf32>,
    %c0_20 = arith.constant 0 : index
    %c20 = arith.constant 20 : index
    %16 = vector.load %arg9[%c0_20, %c20] : memref<8x256xf32, #tpu.memory_space<vmem>>, vector<8x128xf32>
    %c40 = arith.constant 40 : index
    %c0_21 = arith.constant 0 : index
    %17 = vector.load %arg10[%c40, %c0_21] : memref<72x128xf32, #tpu.memory_space<vmem>>, vector<8x128xf32>
    tpu.vector_store %arg10[%c40, %c0_21], %16 {strides = array<i32>} : memref<72x128xf32, #tpu.memory_space<vmem>>, vector<8x128xf32>,
    %c0_22 = arith.constant 0 : index
    %c36 = arith.constant 36 : index
    %18 = vector.load %arg9[%c0_22, %c36] : memref<8x256xf32, #tpu.memory_space<vmem>>, vector<8x128xf32>
    %c48 = arith.constant 48 : index
    %c0_23 = arith.constant 0 : index
    %19 = vector.load %arg10[%c48, %c0_23] : memref<72x128xf32, #tpu.memory_space<vmem>>, vector<8x128xf32>
    tpu.vector_store %arg10[%c48, %c0_23], %18 {strides = array<i32>} : memref<72x128xf32, #tpu.memory_space<vmem>>, vector<8x128xf32>,
    %c0_24 = arith.constant 0 : index
    %c37 = arith.constant 37 : index
    %20 = vector.load %arg9[%c0_24, %c37] : memref<8x256xf32, #tpu.memory_space<vmem>>, vector<8x128xf32>
    %c56 = arith.constant 56 : index
    %c0_25 = arith.constant 0 : index
    %21 = vector.load %arg10[%c56, %c0_25] : memref<72x128xf32, #tpu.memory_space<vmem>>, vector<8x128xf32>
    tpu.vector_store %arg10[%c56, %c0_25], %20 {strides = array<i32>} : memref<72x128xf32, #tpu.memory_space<vmem>>, vector<8x128xf32>,
    %c0_26 = arith.constant 0 : index
    %c38 = arith.constant 38 : index
    %22 = vector.load %arg9[%c0_26, %c38] : memref<8x256xf32, #tpu.memory_space<vmem>>, vector<8x128xf32>
    %c64 = arith.constant 64 : index
    %c0_27 = arith.constant 0 : index
    %23 = vector.load %arg10[%c64, %c0_27] : memref<72x128xf32, #tpu.memory_space<vmem>>, vector<8x128xf32>
    tpu.vector_store %arg10[%c64, %c0_27], %22 {strides = array<i32>} : memref<72x128xf32, #tpu.memory_space<vmem>>, vector<8x128xf32>,
    %c0_28 = arith.constant 0 : index
    %c0_29 = arith.constant 0 : index
    %24 = vector.load %arg4[%c0_28, %c0_29] : memref<8x72xf32, #tpu.memory_space<vmem>>, vector<8x72xf32>
    %c0_30 = arith.constant 0 : index
    %c0_31 = arith.constant 0 : index
    %25 = vector.load %arg10[%c0_30, %c0_31] : memref<72x128xf32, #tpu.memory_space<vmem>>, vector<72x128xf32>
    %cst = arith.constant dense<0.000000e+00> : vector<8x128xf32>
    %26 = tpu.matmul %24, %25, %cst {dimension_numbers = #tpu.dot_dimension_numbers<[1], [0], [0], [1], [0, 0, 1, 1], [], []>} : vector<8x72xf32>, vector<72x128xf32>, vector<8x128xf32> -> vector<8x128xf32>
    %c0_32 = arith.constant 0 : index
    %c0_33 = arith.constant 0 : index
    %27 = vector.load %arg5[%c0_32, %c0_33] : memref<8x1xf32, #tpu.memory_space<vmem>>, vector<8x1xf32>
    %28 = vector.broadcast %27 : vector<8x1xf32> to vector<8x128xf32>
    %29 = arith.addf %26, %28 : vector<8x128xf32>
    %cst_34 = arith.constant 5.000000e-01 : f32
    %30 = vector.broadcast %cst_34 : f32 to vector<8x128xf32>
    %31 = arith.mulf %30, %29 : vector<8x128xf32>
    %cst_35 = arith.constant 0.707106769 : f32
    %32 = vector.broadcast %cst_35 : f32 to vector<8x128xf32>
    %33 = arith.mulf %29, %32 : vector<8x128xf32>
    %cst_36 = arith.constant 0.000000e+00 : f32
    %34 = vector.broadcast %cst_36 : f32 to vector<8x128xf32>
    %35 = arith.cmpf oge, %33, %34 : vector<8x128xf32>
    %cst_37 = arith.constant 1.000000e+00 : f32
    %cst_38 = arith.constant -1.000000e+00 : f32
    %36 = vector.broadcast %cst_37 : f32 to vector<8x128xf32>
    %37 = vector.broadcast %cst_38 : f32 to vector<8x128xf32>
    %38 = arith.select %35, %36, %37 : vector<8x128xi1>, vector<8x128xf32>
    %39 = arith.mulf %33, %38 : vector<8x128xf32>
    %cst_39 = arith.constant 0.327591091 : f32
    %40 = vector.broadcast %cst_39 : f32 to vector<8x128xf32>
    %41 = arith.mulf %40, %39 : vector<8x128xf32>
    %cst_40 = arith.constant 1.000000e+00 : f32
    %42 = vector.broadcast %cst_40 : f32 to vector<8x128xf32>
    %43 = arith.addf %42, %41 : vector<8x128xf32>
    %44 = tpu.reciprocal %43 {approx = true} : vector<8x128xf32> -> vector<8x128xf32>
    %45 = arith.mulf %43, %44 : vector<8x128xf32>
    %cst_41 = arith.constant 2.000000e+00 : f32
    %46 = vector.broadcast %cst_41 : f32 to vector<8x128xf32>
    %47 = arith.subf %46, %45 : vector<8x128xf32>
    %48 = arith.mulf %44, %47 : vector<8x128xf32>
    %cst_42 = arith.constant 1.06140542 : f32
    %49 = vector.broadcast %cst_42 : f32 to vector<8x128xf32>
    %50 = arith.mulf %49, %48 : vector<8x128xf32>
    %cst_43 = arith.constant -1.45315206 : f32
    %51 = vector.broadcast %cst_43 : f32 to vector<8x128xf32>
    %52 = arith.addf %50, %51 : vector<8x128xf32>
    %53 = arith.mulf %52, %48 : vector<8x128xf32>
    %cst_44 = arith.constant 1.42141378 : f32
    %54 = vector.broadcast %cst_44 : f32 to vector<8x128xf32>
    %55 = arith.addf %53, %54 : vector<8x128xf32>
    %56 = arith.mulf %55, %48 : vector<8x128xf32>
    %cst_45 = arith.constant -0.284496725 : f32
    %57 = vector.broadcast %cst_45 : f32 to vector<8x128xf32>
    %58 = arith.addf %56, %57 : vector<8x128xf32>
    %59 = arith.mulf %58, %48 : vector<8x128xf32>
    %cst_46 = arith.constant 0.254829586 : f32
    %60 = vector.broadcast %cst_46 : f32 to vector<8x128xf32>
    %61 = arith.addf %59, %60 : vector<8x128xf32>
    %62 = arith.mulf %61, %48 : vector<8x128xf32>
    %cst_47 = arith.constant 0.000000e+00 : f32
    %63 = vector.broadcast %cst_47 : f32 to vector<8x128xf32>
    %64 = arith.subf %63, %39 : vector<8x128xf32>
    %65 = arith.mulf %64, %39 : vector<8x128xf32>
    %66 = math.exp %65 : vector<8x128xf32>
    %67 = arith.mulf %62, %66 : vector<8x128xf32>
    %cst_48 = arith.constant 1.000000e+00 : f32
    %68 = vector.broadcast %cst_48 : f32 to vector<8x128xf32>
    %69 = arith.subf %68, %67 : vector<8x128xf32>
    %70 = arith.mulf %38, %69 : vector<8x128xf32>
    %cst_49 = arith.constant 1.000000e+00 : f32
    %71 = vector.broadcast %cst_49 : f32 to vector<8x128xf32>
    %72 = arith.addf %71, %70 : vector<8x128xf32>
    %73 = arith.mulf %31, %72 : vector<8x128xf32>
    %c0_50 = arith.constant 0 : index
    %c0_51 = arith.constant 0 : index
    %74 = vector.load %arg6[%c0_50, %c0_51] : memref<4x8xf32, #tpu.memory_space<vmem>>, vector<4x8xf32>
    %cst_52 = arith.constant dense<0.000000e+00> : vector<4x128xf32>
    %75 = tpu.matmul %74, %73, %cst_52 {dimension_numbers = #tpu.dot_dimension_numbers<[1], [0], [0], [1], [0, 0, 1, 1], [], []>} : vector<4x8xf32>, vector<8x128xf32>, vector<4x128xf32> -> vector<4x128xf32>
    %c0_53 = arith.constant 0 : index
    %c0_54 = arith.constant 0 : index
    %76 = vector.load %arg7[%c0_53, %c0_54] : memref<4x1xf32, #tpu.memory_space<vmem>>, vector<4x1xf32>
    %77 = vector.broadcast %76 : vector<4x1xf32> to vector<4x128xf32>
    %78 = arith.addf %75, %77 : vector<4x128xf32>
    %c0_55 = arith.constant 0 : index
    %c0_56 = arith.constant 0 : index
    %c0_57 = arith.constant 0 : index
    %79 = vector.load %arg8[%c0_55, %c0_56, %c0_57] : memref<1x4x128xf32, #tpu.memory_space<vmem>>, vector<1x4x128xf32>
    %80 = vector.shape_cast %79 : vector<1x4x128xf32> to vector<4x128xf32>
    %81 = vector.shape_cast %78 : vector<4x128xf32> to vector<1x4x128xf32>
    tpu.vector_store %arg8[%c0_55, %c0_56, %c0_57], %81 {strides = array<i32>} : memref<1x4x128xf32, #tpu.memory_space<vmem>>, vector<1x4x128xf32>,
    return
  }
  func.func @transform_0(%arg0: i32, %arg1: i32) -> (i32, i32, i32) {
    %c0_i32 = arith.constant 0 : i32
    %c0_i32_0 = arith.constant 0 : i32
    return %arg0, %c0_i32, %arg1 : i32, i32, i32
  }
  func.func @transform_1(%arg0: i32, %arg1: i32) -> (i32, i32, i32) {
    %c1_i32 = arith.constant 1 : i32
    %0 = arith.addi %arg1, %c1_i32 : i32
    %c1_i32_0 = arith.constant 1 : i32
    %1 = arith.muli %0, %c1_i32_0 : i32
    %c0_i32 = arith.constant 0 : i32
    %c0_i32_1 = arith.constant 0 : i32
    return %arg0, %c0_i32, %1 : i32, i32, i32
  }
  func.func @transform_2(%arg0: i32, %arg1: i32) -> (i32, i32) {
    %c0_i32 = arith.constant 0 : i32
    %c0_i32_0 = arith.constant 0 : i32
    %c0_i32_1 = arith.constant 0 : i32
    return %c0_i32, %c0_i32_0 : i32, i32
  }
  func.func @transform_3(%arg0: i32, %arg1: i32) -> (i32, i32) {
    %c0_i32 = arith.constant 0 : i32
    %c0_i32_0 = arith.constant 0 : i32
    %c0_i32_1 = arith.constant 0 : i32
    return %c0_i32, %c0_i32_0 : i32, i32
  }
  func.func @transform_4(%arg0: i32, %arg1: i32) -> (i32, i32) {
    %c0_i32 = arith.constant 0 : i32
    %c0_i32_0 = arith.constant 0 : i32
    %c0_i32_1 = arith.constant 0 : i32
    return %c0_i32, %c0_i32_0 : i32, i32
  }
  func.func @transform_5(%arg0: i32, %arg1: i32) -> (i32, i32) {
    %c0_i32 = arith.constant 0 : i32
    %c0_i32_0 = arith.constant 0 : i32
    %c0_i32_1 = arith.constant 0 : i32
    return %c0_i32, %c0_i32_0 : i32, i32
  }
  func.func @transform_6(%arg0: i32, %arg1: i32) -> (i32, i32, i32) {
    %c0_i32 = arith.constant 0 : i32
    %c0_i32_0 = arith.constant 0 : i32
    return %arg0, %c0_i32, %arg1 : i32, i32, i32
  }
}

</mosaic_0001>

<bundles_post_ra>
// kernel: tpu_custom_call.1
= control target key start
LH: loop header
LB: loop body
LE: loop exit
PB: predicated region body
PF: predicated region fallthrough
CT: control target
= control target key end

     0   :  { %s1476_s0 = inlined_call_operand.hbm [shape: f32[2,8,512], index: 0, kind: input, shape index: {}]   ;;  %s1477_s1 = inlined_call_operand.hbm [shape: f32[2,8,512], index: 1, kind: input, shape index: {}]   ;;  %s1478_s2 = inlined_call_operand.vmem [shape: f32[8,72], index: 2, kind: input, shape index: {}]   ;;  %s1479_s3 = inlined_call_operand.vmem [shape: f32[8,1], index: 3, kind: input, shape index: {}]   ;;  %s1480_s4 = inlined_call_operand.vmem [shape: f32[4,8], index: 4, kind: input, shape index: {}]   ;;  %s1481_s5 = inlined_call_operand.vmem [shape: f32[4,1], index: 5, kind: input, shape index: {}]   ;;  %s1482_s6 = inlined_call_operand.hbm [shape: f32[2,4,384], index: 6, kind: output, shape index: {}]  }
   0x1   :  { %1491 = sst [smem:[#allocation19_spill]] %s1480_s4 }
   0x2   :  { %1492 = sst [smem:[#allocation20_spill]] %s1482_s6 }
   0x3   :  { %11 = vsyncpa [#allocation5], 0 }
   0x4   :  { %13 = vsyncpa [#allocation5 + $0x1], 0 }
   0x5   :  { %14 = vsyncpa [#allocation8], 0 }
   0x6   :  { %16 = vsyncpa [#allocation8 + $0x1], 0 }
   0x7   :  { %17 = vsyncpa [#allocation6], 0 }
   0x8   :  { %19 = vsyncpa [#allocation6 + $0x1], 0  ;;  %s1177_s21 = smov 0   ;;  %s1179_s22 = smov 0  }
   0x9   :  { %s1181_s23 = smov 0   ;;  %s1183_s24 = smov 0  }
   0xa   :  { %s1185_s25 = smov 0   ;;  %s1187_s26 = smov 0  }
   0xb   :  { %s1189_s27 = smov 0   ;;  %s1191_s28 = smov 0  }
   0xc   :  { %s1193_s29 = smov 0   ;;  %s1195_s30 = smov 0  }
   0xd   :  { %s1197_s7 = smov 0  }
   0xe LB: > { %1493 = sst [smem:[#allocation13_spill]] %s1109_s27  ;;  %s760_s8 = sadd.s32 4294967295, %s1125_s7   ;;  %s1125_s7 = sphi %s1197_s7, %s25_s7   ;;  %s1121_s30 = sphi %s1195_s30, %s1520_s30   ;;  %s1117_s29 = sphi %s1193_s29, %s1528_s29   ;;  %s1113_s28 = sphi %s1191_s28, %s1518_s28   ;;  %s1109_s27 = sphi %s1189_s27, %s1527_s27   ;;  %s1105_s26 = sphi %s1187_s26, %s1526_s26   ;;  %s1101_s25 = sphi %s1185_s25, %s1525_s25   ;;  %s1097_s24 = sphi %s1183_s24, %s1524_s24   ;;  %s1093_s23 = sphi %s1181_s23, %s1523_s23   ;;  %s1089_s22 = sphi %s1179_s22, %s1522_s22   ;;  %s1085_s21 = sphi %s1177_s21, %s1521_s21  }
   0xf   : > { %1494 = sst [smem:[#allocation14_spill]] %s1121_s30  ;;  %s761_s9 = sadd.s32 4294967294, %s1125_s7  }
  0x10   : > { %s34_s10 = sadd.s32 1, %s1117_s29  ;;  %s37_s11 = sadd.s32 1, %s1121_s30 }
  0x11   : > { %p35_p0 = scmp.ge.s32.totalorder %s34_s10, 3  ;;  %s46_s12 = sadd.s32 1, %s1105_s26 }
  0x12   : > { %p53_p1 = scmp.ne.s32.totalorder %s1105_s26, %s1101_s25  ;;  %p1487_p2 = scmp.eq.s32.totalorder %s1125_s7, 0 }
  0x13   : > { %s1240_s13 = scalar_select %p35_p0, 0, %s34_s10  }
  0x14   : > { %s1530_s11 = smov (!%p35_p0, %s37_s11), %s1121_s30  ;;  %p1250_p3 = por %p1487_p2, %p53_p1 }
  0x15   : > { %1495 = sst [smem:[#allocation15_spill]] %s1240_s13  ;;  %s42_s14 = ssub.s32 %s1117_s29, %s1240_s13 }
  0x16   : > { %p39_p4 = scmp.ge.s32.totalorder %s1530_s11, 2  ;;  %p59_p5 = scmp.ne.s32.totalorder %s1101_s25, %s1097_s24 }
  0x17   : > { %p1256_p6 = scmp.eq.s32.totalorder %s760_s8, 0  ;;  %s70_s17 = sadd.s32 1, %s1240_s13 }
  0x18   : > { %s1532_s11 = smov (%p39_p4, %s1530_s11), 0  ;;  %s72_s19 = ssub.s32 %s34_s10, %s70_s17 }
  0x19   : > { %1498 = sst [smem:[#allocation16_spill]] %s1532_s11  ;;  %p1268_p7 = por %p1256_p6, %p59_p5 }
  0x1a   : > { %s41_s20 = ssub.s32 %s1121_s30, %s1532_s11  ;;  %p199_p8 = scmp.eq.s32.totalorder %s760_s8, 5 }
  0x1b   : > { %s43_s6 = sor.u32 %s42_s14, %s41_s20  ;;  %s73_s4 = sor.u32 %s72_s19, %s41_s20 }
  0x1c   : > { %p44_p9 = scmp.eq.s32.totalorder %s43_s6, 0  ;;  %p1274_p10 = scmp.eq.s32.totalorder %s73_s4, 0 }
  0x1d   : > { %p1281_p11 = por %p199_p8, %p53_p1  ;;  %p205_p12 = scmp.eq.s32.totalorder %s761_s9, 5 }
  0x1e   : > { %s1286_s10 = scalar_select %p44_p9, %s1105_s26, %s46_s12  }
  0x1f   : > { %s1501_s27 = scalar_select %p1281_p11, 1, 0 }
  0x20   : > { %1502 = sst [smem:[#allocation17_spill]] %s1286_s10  ;;  %p1291_p13 = por %p205_p12, %p59_p5 }
  0x21   : > { %p1490_p0 = scmp.lt.s32.totalorder %s1125_s7, 6  ;;  %s237_s4 = sand.u32 1, %s1105_s26  }
  0x22   : > { %s1503_s8 = scalar_select %p1291_p13, 1, 0 }
  0x23   : > { %s764_s6 = sshll.u32 %s237_s4, 3  ;;  %s765_s14 = sshll.u32 %s1121_s30, 2 }
  0x24   : > { %1504 = sst [smem:[#allocation18_spill]] %s1503_s8  ;;  %s1299_s17 = sadd.s32 %s1117_s29, %s765_s14 }
  0x25   : > { %s241_s19 = scalar_lea.vmem [#allocation4], %s764_s6  ;;  %s766_s11 = sshll.u32 %s1299_s17, 7 }
  0x26   : > { %s250_s20 = sshll.u32 %s241_s19, 4  ;;  %s248_s10 = scalar_lea.hbm %s1476_s0, %s766_s11  ;;  %s251_s20 = int_to_ptr.vmem [resolvable:$true] %s250_s20 }
  0x27   : > { %p1311_p1 = pnand %p1490_p0, %p1250_p3  ;;  %p770_p4 = scmp.ge.s32.totalorder %s1125_s7, 1 }
  0x28   : > { %p276_p5 = scmp.lt.s32.totalorder %s1125_s7, 7  ;;  %s238_s14 = scalar_lea.sflag [#allocation5], %s237_s4 }
  0x29   : > { %p946_p8 = pneg %p1311_p1  ;;  %s957_s6 = scalar_lea.vmem %s251_s20, 128 }
  0x2a   : > { %p958_p9 = scmp.ne.s32.totalorder %s251_s20, %s957_s6  ;;  %s1127_s19 = smov [#allocation4]  }
  0x2b   : > { %s962_s30 = sshll.u32 %s1127_s19, 4  ;;  %s963_s30 = int_to_ptr.vmem [resolvable:$false] %s962_s30 }
  0x2c   : > { %p960_p12 = pnand %p958_p9, %p946_p8  ;;  %s964_s9 = scalar_lea.vmem %s963_s30, 256 }
  0x2d   : > { %p965_p13 = scmp.lt.s32.totalorder %s251_s20, %s963_s30  ;;  %p966_p11 = scmp.lt.s32.totalorder %s964_s9, %s957_s6 }
  0x2e   : > { %p961_p2 = pneg %p960_p12 }
  0x2f   : > { %p967_p3 = por %p966_p11, %p965_p13 }
  0x31   : > { %p968_p0 = pnand %p967_p3, %p961_p2 }
  0x33   : > { %971 = shalt.err (!%p968_p0)
}
  0x34   : > { %828 = dma.hbm_to_vmem [thread:$0]  (!%p1311_p1), %s248_s10, 128, %s251_s20, %s238_s14  }
  0x35   : > { %p1325_p2 = pnand %p770_p4, %p276_p5  ;;  %s76_s15 = sadd.s32 1, %s1093_s23 }
  0x36   : > { %p83_p11 = scmp.ne.s32.totalorder %s1093_s23, %s1089_s22  ;;  %p1507_p13 = scmp.eq.s32.totalorder %s1125_s7, 0 }
  0x37   : > { %s1335_s8 = scalar_select %p1274_p10, %s1093_s23, %s76_s15  }
  0x38   : > { %p85_p0 = por %p83_p11, %p1507_p13  ;;  %p89_p8 = scmp.ne.s32.totalorder %s1089_s22, %s1085_s21 }
  0x39   : > { %s257_s4 = sand.u32 1, %s1093_s23   ;;  %s689_s10 = scalar_lea.hbm %s1477_s1, %s766_s11 }
  0x3a   : > { %p1349_p1 = por %p89_p8, %p1256_p6  ;;  %s767_s14 = sshll.u32 %s257_s4, 3 }
  0x3b   : > { %s690_s19 = scalar_lea.hbm %s689_s10, 128  ;;  %p1509_p4 = scmp.lt.s32.totalorder %s1125_s7, 6 }
  0x3c   : > { %s261_s21 = scalar_lea.vmem [#allocation7], %s767_s14  ;;  %s258_s17 = scalar_lea.sflag [#allocation8], %s257_s4 }
  0x3d   : > { %p1355_p5 = pnand %p1509_p4, %p85_p0  ;;  %s271_s9 = sshll.u32 %s261_s21, 4  ;;  %s272_s9 = int_to_ptr.vmem [resolvable:$true] %s271_s9 }
  0x3e   : > { %s985_s11 = scalar_lea.vmem %s272_s9, 128  ;;  %s1128_s16 = smov [#allocation7]  }
  0x3f   : > { %p974_p10 = pneg %p1355_p5  ;;  %p986_p9 = scmp.ne.s32.totalorder %s272_s9, %s985_s11 }
  0x40   : > { %s990_s15 = sshll.u32 %s1128_s16, 4  ;;  %s991_s15 = int_to_ptr.vmem [resolvable:$false] %s990_s15 }
  0x41   : > { %p988_p6 = pnand %p986_p9, %p974_p10  ;;  %s992_s12 = scalar_lea.vmem %s991_s15, 256 }
  0x42   : > { %p993_p3 = scmp.lt.s32.totalorder %s272_s9, %s991_s15  ;;  %p994_p11 = scmp.lt.s32.totalorder %s992_s12, %s985_s11 }
  0x43   : > { %p989_p12 = pneg %p988_p6 }
  0x44   : > { %p995_p13 = por %p994_p11, %p993_p3 }
  0x46   : > { %p996_p0 = pnand %p995_p13, %p989_p12 }
  0x48   : > { %999 = shalt.err (!%p996_p0)
}
  0x49   : > { %831 = dma.hbm_to_vmem [thread:$0]  (!%p1355_p5), %s690_s19, 128, %s272_s9, %s258_s17  }
  0x4a   : > { %280 = sbr.rel (%p1325_p2) target bundleno = 695 (0x2b7), region = 44  ;;  %s1366_s4 = sand.u32 (!%p1325_p2), 1, %s1101_s25  }
  0x4b   : > { %s771_s6 = sshll.u32 (!%p1325_p2), %s1366_s4, 3  ;;  %s283_s10 = scalar_lea.sflag (!%p1325_p2), [#allocation5], %s1366_s4 }
  0x4c   : > { %s286_s14 = scalar_lea.vmem (!%p1325_p2), [#allocation4], %s771_s6 }
  0x4f   : > { %1072 = dma.done.wait (%p1268_p7), %s283_s10, 128  }
  0x50   : > { %1074 = vsyncadd (%p1268_p7), %s283_s10, 4294967168  ;;  %s291_s19 = sand.u32 1, %s1089_s22  }
  0x51   : > { %s772_s13 = sshll.u32 %s291_s19, 3  ;;  %s292_s30 = scalar_lea.sflag [#allocation8], %s291_s19 }
  0x52   : > { %s295_s21 = scalar_lea.vmem [#allocation7], %s772_s13 }
  0x53   : > { %1076 = dma.done.wait (%p1349_p1), %s292_s30, 128  }
  0x54   : > { %1078 = vsyncadd (%p1349_p1), %s292_s30, 4294967168  ;;  %v1129_v0 = vmov 0.0   ;;  %v1381_v1 = vld [vmem:[%s286_s14] sm:$0xff]  ;;  %s1130_s18 = smov 91   ;;  %s1131_s9 = smov 90   ;;  %v332_v2 = vld [vmem:[%s295_s21] sm:$0xff] }
  0x55   : > { %792 = vmatprep.subr.mxu0 %v1129_v0  ;;  %813 = vmatprep.subr.mxu1 %v1129_v0  ;;  %s1132_s17 = smov 92   ;;  %s1133_s20 = smov 108   ;;  %vm1135_vm0 = vmmov 0   ;;  %v1137_v3 = vmov 0   ;;  %v442_v4 = vld [vmem:[%s1479_s3] sm:$0xff]  ;;  %vm428_vm1 = vcmask 736256  }
  0x56   : > { %412 = vrot.lane.b32.xlu1 %v1381_v1, %s1130_s18  ;;  %424 = vrot.lane.b32.xlu0 %v1381_v1, %s1131_s9  ;;  %s1134_s11 = smov 109   ;;  %s1136_s16 = smov 110   ;;  %vm416_vm2 = vcmask 744448   ;;  %vm404_vm3 = vcmask 752640   ;;  %vm392_vm4 = vcmask 883712   ;;  %vm380_vm5 = vcmask 891904  }
  0x57   : > { %810 = vmatprep.mubr.msk.f32.mxu0 %vm1135_vm0, %v1129_v0  ;;  %815 = vmatprep.mubr.msk.f32.mxu1 %vm1135_vm0, %v1129_v0  ;;  %s1138_s15 = smov 126   ;;  %s1139_s12 = smov 127   ;;  %vm368_vm6 = vcmask 900096   ;;  %vm356_vm7 = vcmask 1031168   ;;  %vm344_vm8 = vcmask 1039360   ;;  %v432_v29 = vld [vmem:[%s1478_s2] sm:$0xff] }
  0x58   : > { %938 = vset.pattern.permute.xlu0 %v1137_v3  ;;  %939 = vset.pattern.permute.xlu1 %v1137_v3  ;;  %vm448_vm9 = vcmask 588800   ;;  %v552_v30 = vld [vmem:[%s1481_s5] sm:$0xf]  ;;  %v1140_v36 = vmov -1.0   ;;  %s1511_s21 = sld [smem:[#allocation13_spill]]  ;;  %vm558_vm11 = vcmask 64512  }
  0x59   : > { %s1513_s19 = sld [smem:[#allocation20_spill]]  ;;  %s634_s30 = scalar_lea.sflag [#allocation6], %s1366_s4 }
  0x5a   : > { %414 = vrot.lane.b32.xlu1 %v332_v2, %s1130_s18  ;;  %426 = vrot.lane.b32.xlu0 %v332_v2, %s1131_s9  ;;  %p1514_p2 = scmp.ne.s32.totalorder %s1501_s27, 0 }
  0x5e   : > { %402 = vrot.lane.b32.xlu1 %v332_v2, %s1132_s17  ;;  %400 = vrot.lane.b32.xlu0 %v1381_v1, %s1132_s17  ;;  %s1512_s17 = sld [smem:[#allocation19_spill]] }
  0x62   : > { %390 = vrot.lane.b32.xlu1 %v332_v2, %s1133_s20  ;;  %388 = vrot.lane.b32.xlu0 %v1381_v1, %s1133_s20  ;;  %s818_s20 = smul.u32 3, %s1113_s28  ;;  %s1141_s28 = smov [#allocation9]  }
  0x66   : > { %378 = vrot.lane.b32.xlu1 %v332_v2, %s1134_s11  ;;  %376 = vrot.lane.b32.xlu0 %v1381_v1, %s1134_s11  ;;  %s773_s11 = sshll.u32 %s1366_s4, 2 }
  0x6a   : > { %366 = vrot.lane.b32.xlu1 %v332_v2, %s1136_s16  ;;  %364 = vrot.lane.b32.xlu0 %v1381_v1, %s1136_s16  ;;  %s645_s16 = sadd.s32 %s1511_s21, %s818_s20  ;;  %s1005_s21 = sshll.u32 %s1141_s28, 4  ;;  %s1006_s21 = int_to_ptr.vmem [resolvable:$false] %s1005_s21 }
  0x6b   : > { %s1007_s9 = scalar_lea.vmem %s1006_s21, 128 }
  0x6e   : > { %354 = vrot.lane.b32.xlu1 %v332_v2, %s1138_s15  ;;  %352 = vrot.lane.b32.xlu0 %v1381_v1, %s1138_s15  ;;  %s777_s15 = sshll.u32 %s645_s16, 6 }
  0x6f   : > { %s1420_s13 = scalar_lea.hbm %s1513_s19, %s777_s15 }
  0x72   : > { %342 = vrot.lane.b32.xlu1 %v332_v2, %s1139_s12  ;;  %340 = vrot.lane.b32.xlu0 %v1381_v1, %s1139_s12  ;;  %s328_s12 = scalar_lea.vmem [#allocation9], %s773_s11 }
  0x73   : > { %s649_s6 = sshll.u32 %s328_s12, 4  ;;  %s650_s6 = int_to_ptr.vmem [resolvable:$true] %s649_s6 }
  0x74   : > { %s1001_s18 = scalar_lea.vmem %s650_s6, 64  ;;  %p1008_p4 = scmp.lt.s32.totalorder %s650_s6, %s1006_s21 }
  0x75   : > { %p1002_p7 = scmp.ne.s32.totalorder %s650_s6, %s1001_s18  ;;  %p1009_p5 = scmp.lt.s32.totalorder %s1007_s9, %s1001_s18 }
  0x76   : > { %445 = vperm.xlu0 %938, %v442_v4   ;;  %555 = vperm.xlu1 %939, %v552_v30  }
  0x77   : > { %p1003_p8 = pnand %p1002_p7, %p1514_p2  ;;  %p1010_p10 = por %p1009_p5, %p1008_p4 }
  0x79   : > { %p1004_p1 = pneg %p1003_p8 }
  0x7b   : > { %p1011_p9 = pnand %p1010_p10, %p1004_p1 }
  0xc8   : > { %v413_v5 = vpop.permute.xlu1 %412  ;;  %v425_v6 = vpop.permute.xlu0 %424 }
  0xcc   : > { %v415_v7 = vpop.permute.xlu1 %414  ;;  %v427_v8 = vpop.permute.xlu0 %426 }
  0xcd   : > { %v429_v9 = vsel %vm428_vm1, %v425_v6, %v427_v8  ;;  %v417_v10 = vsel %vm416_vm2, %v413_v5, %v415_v7 }
  0xce   : > { %793 = vmatpush3.msra.mxu0 %v429_v9 }
  0xcf   : > { %794 = vmatprep.subr.mxu0 %v1129_v0 }
  0xd0   : > { %v403_v11 = vpop.permute.xlu1 %402  ;;  %795 = vmatpush3.msra.mxu0 %v417_v10  ;;  %v401_v12 = vpop.permute.xlu0 %400 }
  0xd1   : > { %796 = vmatprep.subr.mxu0 %v1129_v0  ;;  %v405_v13 = vsel %vm404_vm3, %v401_v12, %v403_v11 }
  0xd2   : > { %797 = vmatpush3.msra.mxu0 %v405_v13 }
  0xd3   : > { %798 = vmatprep.subr.mxu0 %v1129_v0 }
  0xd4   : > { %v391_v14 = vpop.permute.xlu1 %390  ;;  %v389_v15 = vpop.permute.xlu0 %388 }
  0xd5   : > { %v393_v16 = vsel %vm392_vm4, %v389_v15, %v391_v14 }
  0xd6   : > { %799 = vmatpush3.msra.mxu0 %v393_v16 }
  0xd7   : > { %800 = vmatprep.subr.mxu0 %v1129_v0 }
  0xd8   : > { %v379_v17 = vpop.permute.xlu1 %378  ;;  %v377_v18 = vpop.permute.xlu0 %376 }
  0xd9   : > { %v381_v19 = vsel %vm380_vm5, %v377_v18, %v379_v17 }
  0xda   : > { %801 = vmatpush3.msra.mxu0 %v381_v19 }
  0xdb   : > { %802 = vmatprep.subr.mxu0 %v1129_v0 }
  0xdc   : > { %v367_v20 = vpop.permute.xlu1 %366  ;;  %v365_v21 = vpop.permute.xlu0 %364 }
  0xdd   : > { %v369_v22 = vsel %vm368_vm6, %v365_v21, %v367_v20 }
  0xde   : > { %803 = vmatpush3.msra.mxu0 %v369_v22 }
  0xdf   : > { %804 = vmatprep.subr.mxu0 %v1129_v0 }
  0xe0   : > { %v355_v23 = vpop.permute.xlu1 %354  ;;  %v353_v24 = vpop.permute.xlu0 %352 }
  0xe1   : > { %v357_v25 = vsel %vm356_vm7, %v353_v24, %v355_v23 }
  0xe2   : > { %805 = vmatpush3.msra.mxu0 %v357_v25 }
  0xe3   : > { %806 = vmatprep.subr.mxu0 %v1129_v0 }
  0xe4   : > { %v343_v26 = vpop.permute.xlu1 %342  ;;  %v341_v27 = vpop.permute.xlu0 %340 }
  0xe5   : > { %v345_v28 = vsel %vm344_vm8, %v341_v27, %v343_v26 }
  0xe6   : > { %807 = vmatpush3.msra.mxu0 %v345_v28 }
  0xe7   : > { %808 = vmatprep.subr.mxu0 %v1129_v0  ;;  %v551_v0 = vld [vmem:[%s1512_s17] sm:$0xf] }
  0xe8   : > { %809 = vmatpush3.msra.mxu0 %v1381_v1 }
  0xe9   : > { %811 = vmatmul.mubr.msk.f32.vlgmr.msra.gmra.mxu0 %vm448_vm9, %v432_v29 }
  0xf1   : > { %v446_v31 = vpop.permute.xlu0 %445  ;;  %v556_v1 = vpop.permute.xlu1 %555 }
 0x1a9   : > { %v518_v32 = vpop.f32.mrf.mxu0 }
 0x1aa   : > { %v519_v33 = vadd.f32 %v518_v32, %v446_v31 }
 0x1ab   : > { %v812_v34 = vpop.f32.mrf.mxu0 }
 0x1ac   : > { %v523_v35 = vmul.f32 0.70710677, %v519_v33  ;;  %v522_v61 = vmul.f32 0.5, %v519_v33 }
 0x1ae   : > { %vm524_vm10 = vcmp.ge.f32.partialorder %v523_v35, 0.0 }
 0x1af   : > { %v525_v37 = vsel %vm524_vm10, 1.0, %v1140_v36 }
 0x1b0   : > { %v526_v38 = vmul.f32 %v525_v37, %v523_v35 }
 0x1b2   : > { %v527_v39 = vmul.f32 0.3275911, %v526_v38  ;;  %v542_v41 = vsub.f32 0.0, %v526_v38 }
 0x1b4   : > { %v528_v40 = vadd.f32 1.0, %v527_v39  ;;  %v543_v45 = vmul.f32 %v542_v41, %v526_v38 }
 0x1b6   : > { %940 = vrcp.f32 %v528_v40  ;;  %v544_v47 = vmul.f32 1.442695, %v543_v45 }
 0x1b8   : > { %942 = vpow2.f32 %v544_v47 }
 0x1c3   : > { %v941_v42 = vpop.eup %940 }
 0x1c4   : > { %v530_v43 = vmul.f32 %v941_v42, %v528_v40 }
 0x1c5   : > { %v943_v57 = vpop.eup %942 }
 0x1c6   : > { %v531_v44 = vsub.f32 2.0, %v530_v43 }
 0x1c8   : > { %v532_v46 = vmul.f32 %v941_v42, %v531_v44 }
 0x1ca   : > { %v533_v48 = vmul.f32 1.0614054, %v532_v46 }
 0x1cc   : > { %v534_v49 = vadd.f32 -1.4531521, %v533_v48 }
 0x1ce   : > { %v535_v50 = vmul.f32 %v534_v49, %v532_v46 }
 0x1d0   : > { %v536_v51 = vadd.f32 1.4214138, %v535_v50 }
 0x1d2   : > { %v537_v52 = vmul.f32 %v536_v51, %v532_v46 }
 0x1d4   : > { %v538_v53 = vadd.f32 -0.28449672, %v537_v52 }
 0x1d6   : > { %v539_v54 = vmul.f32 %v538_v53, %v532_v46 }
 0x1d8   : > { %v540_v55 = vadd.f32 0.2548296, %v539_v54 }
 0x1da   : > { %v541_v56 = vmul.f32 %v540_v55, %v532_v46 }
 0x1dc   : > { %v546_v58 = vmul.f32 %v943_v57, %v541_v56 }
 0x1de   : > { %v547_v59 = vsub.f32 1.0, %v546_v58 }
 0x1e0   : > { %v548_v60 = vmul.f32 %v547_v59, %v525_v37 }
 0x1e2   : > { %v549_v62 = vadd.f32 1.0, %v548_v60 }
 0x1e4   : > { %v550_v63 = vmul.f32 %v549_v62, %v522_v61 }
 0x1e6   : > { %814 = vmatpush3.msra.mxu1 %v550_v63 }
 0x1e7   : > { %816 = vmatmul.mubr.msk.f32.vlgmr.msra.gmra.mxu1 %vm558_vm11, %v551_v0 }
 0x2a7   : > { %v628_v2 = vpop.f32.mrf.mxu1 }
 0x2a8   : > { %v629_v3 = vadd.f32 %v628_v2, %v556_v1 }
 0x2a9   : > { %v817_v4 = vpop.f32.mrf.mxu1 }
 0x2aa   : > { %632 = vst [vmem:[%s328_s12] sm:$0xf] %v629_v3 }
 0x2ab   : > { %1014 = shalt.err (!%p1011_p9)
}
 0x2ac   : > { %s1015_s17 = scalar_lea.hbm %s1420_s13, 64  ;;  %s1019_s11 = scalar_lea.hbm %s1513_s19, 384 }
 0x2ad   : > { %p1016_p6 = scmp.ne.s32.totalorder %s1420_s13, %s1015_s17  ;;  %p1020_p11 = scmp.lt.s32.totalorder %s1420_s13, %s1513_s19 }
 0x2ae   : > { %p1021_p13 = scmp.lt.s32.totalorder %s1019_s11, %s1015_s17 }
 0x2af   : > { %p1017_p12 = pnand %p1016_p6, %p1514_p2 }
 0x2b0   : > { %p1022_p0 = por %p1021_p13, %p1020_p11 }
 0x2b1   : > { %p1018_p3 = pneg %p1017_p12 }
 0x2b3   : > { %p1023_p7 = pnand %p1022_p0, %p1018_p3 }
 0x2b5   : > { %1026 = shalt.err (!%p1023_p7)
}
 0x2b6   : > { %823 = dma.vmem_to_hbm [thread:$0]  (%p1514_p2), %s650_s6, 64, %s1420_s13, %s634_s30  }
 0x2b7 PF: > { %s1515_s12 = sld [smem:[#allocation18_spill]]  ;;  %p837_p8 = scmp.ge.s32.totalorder %s1125_s7, 2 }
 0x2b8   : > { %s661_s10 = sand.u32 1, %s1097_s24  }
 0x2b9   : > { %s662_s14 = scalar_lea.sflag [#allocation6], %s661_s10 }
 0x2bd   : > { %p1516_p1 = scmp.ne.s32.totalorder %s1515_s12, 0 }
 0x2bf   : > { %p833_p4 = pnand %p837_p8, %p1516_p1 }
 0x2c1   : > { %p834_p5 = pneg %p833_p4 }
 0x2c3   : > { %1080 = dma.done.wait (%p834_p5), %s662_s14, 64  }
 0x2c4   : > { %1082 = vsyncadd (%p834_p5), %s662_s14, 4294967232  ;;  %s25_s7 = sadd.s32 1, %s1125_s7   ;;  %s1517_s27 = sld [smem:[#allocation17_spill]] }
 0x2c5   : > { %p22_p10 = scmp.ge.s32.totalorder %s25_s7, 8   ;;  %s1518_s28 = sld [smem:[#allocation14_spill]] }
 0x2c6   : > { %s1519_s6 = sld [smem:[#allocation15_spill]]  ;;  %s1521_s21 = smov %s1089_s22 }
 0x2c7   : > { %s1520_s30 = sld [smem:[#allocation16_spill]]  ;;  %s1522_s22 = smov %s1093_s23 }
 0x2c8   : > { %s1523_s23 = smov %s1335_s8  ;;  %s1524_s24 = smov %s1101_s25 }
 0x2c9   : > { %s1525_s25 = smov %s1105_s26  ;;  %24 = sbr.rel (!%p22_p10) target bundleno = 14 (0xe), region = 102 }
 0x2ca   : > { %s1526_s26 = smov %s1517_s27  ;;  %s1527_s27 = smov %s1117_s29 }
 0x2cc   : > { %s1528_s29 = smov %s1519_s6 }
 0x2ce   :  { %667 = vsyncpa [#allocation5], 1 }
 0x2cf   :  { %669 = vsyncpa [#allocation5 + $0x1], 1 }
 0x2d0   :  { %670 = vsyncpa [#allocation8], 1 }
 0x2d1   :  { %672 = vsyncpa [#allocation8 + $0x1], 1 }
 0x2d2   :  { %673 = vsyncpa [#allocation6], 1 }
 0x2d3   :  { %675 = vsyncpa [#allocation6 + $0x1], 1 }

</bundles_post_ra>
